<compile_context>
chip_gen: v7x
topology: tpu7x:2x2x1
jax: 0.10.0
libtpu: 0.0.40
codegen_flags: <defaults>
</compile_context>

<pallas_src>
import jax
import jax.numpy as jnp
from jax import lax
from jax.experimental import pallas as pl
from jax.experimental.pallas import tpu as pltpu


def _round_up(x: int, m: int) -> int:
    return ((x + m - 1) // m) * m


def embbag_fc_kernel(text_ref, start_ref, end_ref, ew_ref, b_ref, out_ref):
    """Fused EmbeddingBag(mean) + Linear, entirely in class space.

    text_ref : (T_pad, 1)      int32  token ids, padded slots = -1
    start_ref: (B_pad, 1)      int32  bag start offsets (padded bags: start=end=T)
    end_ref  : (B_pad, 1)      int32  bag end offsets
    ew_ref   : (V_pad, C_pad)  bf16   fused table emb_table @ fc_w.T (zero padded)
    b_ref    : (1, C_pad)      f32    fc bias (zero padded)
    out_ref  : (B_pad, C_pad)  f32
    """
    T_pad = text_ref.shape[0]
    V_pad = ew_ref.shape[0]
    B_pad = out_ref.shape[0]

    # ---- Token "gather" as a one-hot MXU matmul, directly in class space ----
    tok = text_ref[...]                                               # (T_pad, 1)
    vocab_iota = lax.broadcasted_iota(jnp.int32, (T_pad, V_pad), 1)
    onehot = (tok == vocab_iota).astype(jnp.bfloat16)                 # -1 pads -> zero rows
    tok_logits = jnp.dot(onehot, ew_ref[...],
                         preferred_element_type=jnp.float32)          # (T_pad, C_pad) f32

    # ---- Mean pooling folded into the bag-membership matmul -----------------
    start = start_ref[...]                                            # (B_pad, 1)
    end = end_ref[...]                                                # (B_pad, 1)
    tcol = lax.broadcasted_iota(jnp.int32, (B_pad, T_pad), 1)
    in_bag = jnp.logical_and(tcol >= start, tcol < end).astype(jnp.float32)
    counts = (end - start).astype(jnp.float32)                        # (B_pad, 1)
    inv_cnt = pl.reciprocal(jnp.maximum(counts, 1.0), approx=True)    # EUP; empty bag -> rows are 0 anyway
    pool = (in_bag * inv_cnt).astype(jnp.bfloat16)                    # (B_pad, T_pad)

    out = jnp.dot(pool, tok_logits.astype(jnp.bfloat16),
                  preferred_element_type=jnp.float32) + b_ref[...]    # (B_pad, C_pad)
    out_ref[...] = out                                                 # lane-dense, unmasked store


def prepare_params(emb_table, fc_w, fc_b):
    """One-time weight fusion + padding (call once at model init, not per forward).

    emb_table: [V, D] f32, fc_w: [C, D] f32, fc_b: [C] f32.
    Returns (ew_pad [V_pad, C_pad] bf16, bias_pad [1, C_pad] f32, num_class).
    """
    V, D = emb_table.shape
    C = fc_w.shape[0]
    V_pad = _round_up(V, 128)
    C_pad = _round_up(C, 128)
    ew = jnp.dot(emb_table.astype(jnp.float32), fc_w.T.astype(jnp.float32))  # (V, C) fused in f32
    ew_pad = jnp.zeros((V_pad, C_pad), jnp.bfloat16).at[:V, :C].set(ew.astype(jnp.bfloat16))
    bias_pad = jnp.zeros((1, C_pad), jnp.float32).at[0, :C].set(fc_b.astype(jnp.float32))
    return ew_pad, bias_pad, C


def text_classification_forward(text, offsets, ew_pad, bias_pad, num_class):
    """text: [T] int32, offsets: [B] int32 (bag starts).  Returns [B, num_class] f32."""
    T = text.shape[0]
    B = offsets.shape[0]
    V_pad, C_pad = ew_pad.shape
    T_pad = _round_up(max(T, 1), 128)
    B_pad = _round_up(B, 8)

    # Per-call padding is only for the (tiny) int32 token / offset vectors.
    text_p = jnp.full((T_pad, 1), -1, dtype=jnp.int32).at[:T, 0].set(text.astype(jnp.int32))
    starts = jnp.full((B_pad, 1), T, dtype=jnp.int32).at[:B, 0].set(offsets.astype(jnp.int32))
    ends_src = jnp.concatenate([offsets[1:].astype(jnp.int32),
                                jnp.array([T], dtype=jnp.int32)])
    ends = jnp.full((B_pad, 1), T, dtype=jnp.int32).at[:B, 0].set(ends_src)

    # Advisory cost + explicit VMEM budget (v7x: keep well under 64 MiB).
    flops = 2 * T_pad * V_pad * C_pad + 2 * B_pad * T_pad * C_pad
    bytes_accessed = (text_p.size * 4 + starts.size * 4 + ends.size * 4
                      + ew_pad.size * 2 + bias_pad.size * 4 + B_pad * C_pad * 4)
    work_bytes = (ew_pad.size * 2          # EW table
                  + T_pad * V_pad * 2      # one-hot
                  + T_pad * C_pad * 4      # token logits
                  + B_pad * T_pad * 8      # in_bag / pool
                  + B_pad * C_pad * 8      # out + acc
                  + T_pad * 4 + B_pad * 16)
    vmem_limit = int(min(48 * 1024 * 1024, max(16 * 1024 * 1024, 2 * work_bytes)))

    out_pad = pl.pallas_call(
        embbag_fc_kernel,
        out_shape=jax.ShapeDtypeStruct((B_pad, C_pad), jnp.float32),
        in_specs=[
            pl.BlockSpec(memory_space=pltpu.MemorySpace.VMEM),  # token ids
            pl.BlockSpec(memory_space=pltpu.MemorySpace.VMEM),  # bag starts
            pl.BlockSpec(memory_space=pltpu.MemorySpace.VMEM),  # bag ends
            pl.BlockSpec(memory_space=pltpu.MemorySpace.VMEM),  # fused EW table (bf16)
            pl.BlockSpec(memory_space=pltpu.MemorySpace.VMEM),  # bias
        ],
        out_specs=pl.BlockSpec(memory_space=pltpu.MemorySpace.VMEM),
        cost_estimate=pl.CostEstimate(flops=flops, transcendentals=B_pad,
                                      bytes_accessed=bytes_accessed),
        compiler_params=pltpu.CompilerParams(vmem_limit_bytes=vmem_limit),
    )(text_p, starts, ends, ew_pad, bias_pad)

    return out_pad[:B, :num_class]


def reference_forward(text, offsets, emb_table, fc_w, fc_b):
    """Pure-JAX f32 reference of EmbeddingBag(mean) + Linear (unfused weights)."""
    T = text.shape[0]
    B = offsets.shape[0]
    gathered = emb_table[text]                                         # (T, D)
    pos = jnp.arange(T)
    seg_ids = jnp.sum(pos[:, None] >= offsets[None, :], axis=1) - 1    # bag id per token
    sums = jax.ops.segment_sum(gathered, seg_ids, num_segments=B)      # (B, D)
    counts = jax.ops.segment_sum(jnp.ones((T,), jnp.float32), seg_ids, num_segments=B)
    pooled = sums / jnp.maximum(counts, 1.0)[:, None]
    return pooled @ fc_w.T + fc_b[None, :]


if __name__ == "__main__":
    # Small synthetic shapes consistent with the module.
    vocab_size = 50
    embed_dim = 32
    num_class = 4
    batch_bags = 4          # number of bags (batch size)
    total_tokens = 20       # total tokens across all bags

    key = jax.random.PRNGKey(0)
    k_emb, k_w, k_tok = jax.random.split(key, 3)

    # init_weights(): uniform(-0.5, 0.5) for embedding and fc weight, zero bias.
    initrange = 0.5
    emb_table = jax.random.uniform(
        k_emb, (vocab_size, embed_dim), jnp.float32, -initrange, initrange)
    fc_w = jax.random.uniform(
        k_w, (num_class, embed_dim), jnp.float32, -initrange, initrange)
    fc_b = jnp.zeros((num_class,), jnp.float32)

    # Deterministic "text" batch: flattened token ids + per-bag start offsets.
    text = jax.random.randint(k_tok, (total_tokens,), 0, vocab_size, dtype=jnp.int32)
    offsets = jnp.array([0, 5, 9, 14], dtype=jnp.int32)   # bag starts (B = 4)

    # One-time param prep (fusion + padding), then the per-call forward.
    ew_pad, bias_pad, C = prepare_params(emb_table, fc_w, fc_b)
    out = text_classification_forward(text, offsets, ew_pad, bias_pad, C)
    out = jax.block_until_ready(out)

    ref = reference_forward(text, offsets, emb_table, fc_w, fc_b)
    assert out.shape == (batch_bags, num_class)
    # bf16 matmul operands (f32 accumulation) -> relaxed tolerance vs f32 reference.
    assert jnp.allclose(out, ref, atol=2e-2, rtol=2e-2), (out, ref)

    print("KERNEL_OK")
</pallas_src>

<mosaic_0001>
module attributes {stable_mosaic.version = 11 : i64} {
  func.func @embbag_fc_kernel(%arg0: memref<128x1xi32, #tpu.memory_space<vmem>>, %arg1: memref<8x1xi32, #tpu.memory_space<vmem>>, %arg2: memref<8x1xi32, #tpu.memory_space<vmem>>, %arg3: memref<128x128xbf16, #tpu.memory_space<vmem>>, %arg4: memref<1x128xf32, #tpu.memory_space<vmem>>, %arg5: memref<8x128xf32, #tpu.memory_space<vmem>>) attributes {dimension_semantics = [], scalar_prefetch = 0 : i64, scratch_operands = 0 : i64, tpu.core_type = #tpu.core_type<tc>} {
    %c0 = arith.constant 0 : index
    %c0_0 = arith.constant 0 : index
    %0 = vector.load %arg0[%c0, %c0_0] : memref<128x1xi32, #tpu.memory_space<vmem>>, vector<128x1xi32>
    %1 = tpu.iota {dimensions = array<i32: 1>} : vector<128x128xi32>
    %2 = vector.broadcast %0 : vector<128x1xi32> to vector<128x128xi32>
    %3 = arith.cmpi eq, %2, %1 : vector<128x128xi32>
    %4 = arith.extui %3 : vector<128x128xi1> to vector<128x128xi32>
    %5 = arith.sitofp %4 : vector<128x128xi32> to vector<128x128xf32>
    %6 = arith.truncf %5 : vector<128x128xf32> to vector<128x128xbf16>
    %c0_1 = arith.constant 0 : index
    %c0_2 = arith.constant 0 : index
    %7 = vector.load %arg3[%c0_1, %c0_2] : memref<128x128xbf16, #tpu.memory_space<vmem>>, vector<128x128xbf16>
    %cst = arith.constant dense<0.000000e+00> : vector<128x128xf32>
    %8 = tpu.matmul %6, %7, %cst {dimension_numbers = #tpu.dot_dimension_numbers<[1], [0], [0], [1], [0, 0, 1, 1], [], []>} : vector<128x128xbf16>, vector<128x128xbf16>, vector<128x128xf32> -> vector<128x128xf32>
    %c0_3 = arith.constant 0 : index
    %c0_4 = arith.constant 0 : index
    %9 = vector.load %arg1[%c0_3, %c0_4] : memref<8x1xi32, #tpu.memory_space<vmem>>, vector<8x1xi32>
    %c0_5 = arith.constant 0 : index
    %c0_6 = arith.constant 0 : index
    %10 = vector.load %arg2[%c0_5, %c0_6] : memref<8x1xi32, #tpu.memory_space<vmem>>, vector<8x1xi32>
    %11 = tpu.iota {dimensions = array<i32: 1>} : vector<8x128xi32>
    %12 = vector.broadcast %9 : vector<8x1xi32> to vector<8x128xi32>
    %13 = arith.cmpi sge, %11, %12 : vector<8x128xi32>
    %14 = vector.broadcast %10 : vector<8x1xi32> to vector<8x128xi32>
    %15 = arith.cmpi slt, %11, %14 : vector<8x128xi32>
    %16 = arith.andi %13, %15 : vector<8x128xi1>
    %17 = arith.extui %16 : vector<8x128xi1> to vector<8x128xi32>
    %18 = arith.sitofp %17 : vector<8x128xi32> to vector<8x128xf32>
    %19 = arith.subi %10, %9 : vector<8x1xi32>
    %20 = arith.sitofp %19 : vector<8x1xi32> to vector<8x1xf32>
    %cst_7 = arith.constant 1.000000e+00 : f32
    %21 = vector.broadcast %cst_7 : f32 to vector<8x1xf32>
    %22 = arith.maximumf %20, %21 : vector<8x1xf32>
    %23 = tpu.reciprocal %22 {approx = true} : vector<8x1xf32> -> vector<8x1xf32>
    %24 = vector.broadcast %23 : vector<8x1xf32> to vector<8x128xf32>
    %25 = arith.mulf %18, %24 : vector<8x128xf32>
    %26 = arith.truncf %25 : vector<8x128xf32> to vector<8x128xbf16>
    %27 = arith.truncf %8 : vector<128x128xf32> to vector<128x128xbf16>
    %cst_8 = arith.constant dense<0.000000e+00> : vector<8x128xf32>
    %28 = tpu.matmul %26, %27, %cst_8 {dimension_numbers = #tpu.dot_dimension_numbers<[1], [0], [0], [1], [0, 0, 1, 1], [], []>} : vector<8x128xbf16>, vector<128x128xbf16>, vector<8x128xf32> -> vector<8x128xf32>
    %c0_9 = arith.constant 0 : index
    %c0_10 = arith.constant 0 : index
    %29 = vector.load %arg4[%c0_9, %c0_10] : memref<1x128xf32, #tpu.memory_space<vmem>>, vector<1x128xf32>
    %30 = vector.broadcast %29 : vector<1x128xf32> to vector<8x128xf32>
    %31 = arith.addf %28, %30 : vector<8x128xf32>
    %c0_11 = arith.constant 0 : index
    %c0_12 = arith.constant 0 : index
    %32 = vector.load %arg5[%c0_11, %c0_12] : memref<8x128xf32, #tpu.memory_space<vmem>>, vector<8x128xf32>
    tpu.vector_store %arg5[%c0_11, %c0_12], %31 {strides = array<i32>} : memref<8x128xf32, #tpu.memory_space<vmem>>, vector<8x128xf32>,
    return
  }
}

</mosaic_0001>

<bundles_post_ra>
// kernel: tpu_custom_call.1
= control target key start
LH: loop header
LB: loop body
LE: loop exit
PB: predicated region body
PF: predicated region fallthrough
CT: control target
= control target key end

     0   :  { %v559_v2 = vmov 0   ;;  %s717_s0 = inlined_call_operand.vmem [shape: s32[128,1], index: 0, kind: input, shape index: {}]   ;;  %s718_s1 = inlined_call_operand.vmem [shape: s32[8,1], index: 1, kind: input, shape index: {}]   ;;  %s719_s2 = inlined_call_operand.vmem [shape: s32[8,1], index: 2, kind: input, shape index: {}]   ;;  %s720_s3 = inlined_call_operand.vmem [shape: bf16[128,128], index: 3, kind: input, shape index: {}]   ;;  %s721_s4 = inlined_call_operand.vmem [shape: f32[1,128], index: 4, kind: input, shape index: {}]   ;;  %s722_s5 = inlined_call_operand.hbm [shape: f32[8,128], index: 5, kind: output, shape index: {}]  }
   0x1   :  { %v24_v0 = vld [vmem:[%s717_s0 + $0x10] sm:$0xff]  ;;  %v22_v1 = vld [vmem:[%s717_s0] sm:$0xff]  ;;  %524 = vset.pattern.permute.xlu1 %v559_v2  ;;  %523 = vset.pattern.permute.xlu0 %v559_v2  ;;  %v25_v3 = vld [vmem:[%s717_s0 + $0x18] sm:$0xff] }
   0x2   :  { %47 = vperm.xlu1 %524, %v24_v0   ;;  %41 = vperm.xlu0 %523, %v22_v1   ;;  %v23_v4 = vld [vmem:[%s717_s0 + $0x8] sm:$0xff]  ;;  %v26_v6 = vld [vmem:[%s717_s0 + $0x20] sm:$0xff]  ;;  %v29_v9 = vld [vmem:[%s717_s0 + $0x38] sm:$0xff] }
   0x3   :  { %v27_v5 = vld [vmem:[%s717_s0 + $0x28] sm:$0xff]  ;;  %v525_v7 = vld [vmem:[%s720_s3] sm:$0xff]   ;;  %v28_v10 = vld [vmem:[%s717_s0 + $0x30] sm:$0xff] }
   0x4   :  { %v526_v8 = vld [vmem:[%s720_s3 + $0x8] sm:$0xff]   ;;  %466 = vmatprep.subr.bf16.mxu0 %v525_v7  ;;  %v306_v11 = vld [vmem:[%s719_s2] sm:$0xff]  ;;  %v527_v13 = vld [vmem:[%s720_s3 + $0x10] sm:$0xff]  }
   0x5   :  { %467 = vmatpush3.bf16.msra.mxu0 %v525_v7  ;;  %v305_v12 = vld [vmem:[%s718_s1] sm:$0xff] }
   0x6   :  { %50 = vperm.xlu1 %524, %v25_v3   ;;  %44 = vperm.xlu0 %523, %v23_v4   ;;  %v318_v14 = vsub.s32 %v306_v11, %v305_v12 }
   0x7   :  { %468 = vmatprep.subr.bf16.mxu0 %v526_v8 }
   0x9   :  { %469 = vmatpush3.bf16.msra.mxu0 %v526_v8 }
   0xa   :  { %56 = vperm.xlu1 %524, %v27_v5   ;;  %53 = vperm.xlu0 %523, %v26_v6  }
   0xe   :  { %62 = vperm.xlu1 %524, %v29_v9   ;;  %59 = vperm.xlu0 %523, %v28_v10  }
   0xf   :  { %10 = vsyncpa [#allocation3], 0  ;;  %v31_v15 = vld [vmem:[%s717_s0 + $0x48] sm:$0xff]  ;;  %v30_v16 = vld [vmem:[%s717_s0 + $0x40] sm:$0xff]  ;;  %470 = vmatprep.subr.bf16.mxu0 %v527_v13  ;;  %v319_v18 = vcvt.s32.f32 %v318_v14  ;;  %v560_v31 = vmov 0.0   ;;  %v38_v32 = vlaneseq  ;;  %s563_s18 = smov [#allocation2]  }
  0x10   :  { %v528_v17 = vld [vmem:[%s720_s3 + $0x18] sm:$0xff]   ;;  %471 = vmatpush3.bf16.msra.mxu0 %v527_v13  ;;  %v32_v20 = vld [vmem:[%s717_s0 + $0x50] sm:$0xff]  ;;  %v529_v21 = vld [vmem:[%s720_s3 + $0x20] sm:$0xff]   ;;  %498 = vmatprep.subr.bf16.mxu1 %v560_v31  ;;  %v561_v38 = vmov 1.0|1.0   ;;  %s391_s19 = sshll.u32 %s563_s18, 4  ;;  %s392_s19 = int_to_ptr.vmem [resolvable:$true] %s391_s19 }
  0x11   :  { %v33_v19 = vld [vmem:[%s717_s0 + $0x58] sm:$0xff]  ;;  %472 = vmatprep.subr.bf16.mxu0 %v528_v17  ;;  %v320_v22 = vmax.f32 %v319_v18, 1.0  ;;  %v35_v23 = vld [vmem:[%s717_s0 + $0x68] sm:$0xff]  ;;  %v34_v24 = vld [vmem:[%s717_s0 + $0x60] sm:$0xff]  ;;  %v673_v35 = vand.u32 127, %v38_v32  ;;  %s535_s20 = scalar_lea.vmem %s392_s19, 128  ;;  %p540_p1 = scmp.lt.s32.totalorder %s392_s19, %s392_s19 }
  0x12   :  { %68 = vperm.xlu1 %524, %v31_v15   ;;  %65 = vperm.xlu0 %523, %v30_v16   ;;  %v530_v25 = vld [vmem:[%s720_s3 + $0x28] sm:$0xff]   ;;  %v37_v26 = vld [vmem:[%s717_s0 + $0x78] sm:$0xff]  ;;  %v36_v27 = vld [vmem:[%s717_s0 + $0x70] sm:$0xff]  ;;  %p536_p0 = scmp.ne.s32.totalorder %s392_s19, %s535_s20  ;;  %p541_p2 = scmp.lt.s32.totalorder %s535_s20, %s535_s20 }
  0x13   :  { %533 = vrcp.f32 %v320_v22  ;;  %v531_v28 = vld [vmem:[%s720_s3 + $0x30] sm:$0xff]   ;;  %v532_v29 = vld [vmem:[%s720_s3 + $0x38] sm:$0xff]  }
  0x14   :  { %473 = vmatpush3.bf16.msra.mxu0 %v528_v17  ;;  %v440_v17 = vld [vmem:[%s721_s4] ss:$0 sm:$0xff]  ;;  %p542_p3 = por %p541_p2, %p540_p1 }
  0x15   :  { %474 = vmatprep.subr.bf16.mxu0 %v529_v21 }
  0x16   :  { %74 = vperm.xlu1 %524, %v33_v19   ;;  %71 = vperm.xlu0 %523, %v32_v20   ;;  %p543_p4 = pnand %p542_p3, %p536_p0 }
  0x18   :  { %475 = vmatpush3.bf16.msra.mxu0 %v529_v21 }
  0x19   :  { %476 = vmatprep.subr.bf16.mxu0 %v530_v25 }
  0x1a   :  { %80 = vperm.xlu1 %524, %v35_v23   ;;  %77 = vperm.xlu0 %523, %v34_v24  }
  0x1c   :  { %477 = vmatpush3.bf16.msra.mxu0 %v530_v25 }
  0x1d   :  { %478 = vmatprep.subr.bf16.mxu0 %v531_v28  ;;  %v534_v30 = vpop.eup %533 }
  0x1e   :  { %86 = vperm.xlu1 %524, %v37_v26   ;;  %83 = vperm.xlu0 %523, %v36_v27  }
  0x20   :  { %479 = vmatpush3.bf16.msra.mxu0 %v531_v28 }
  0x21   :  { %480 = vmatprep.subr.bf16.mxu0 %v532_v29 }
  0x22   :  { %312 = vperm.xlu1 %524, %v306_v11   ;;  %308 = vperm.xlu0 %523, %v305_v12  }
  0x24   :  { %481 = vmatpush3.bf16.msra.mxu0 %v532_v29 }
  0x26   :  { %324 = vperm.xlu0 %523, %v534_v30  }
  0x81   :  { %v48_v33 = vpop.permute.xlu1 %47  ;;  %v42_v34 = vpop.permute.xlu0 %41 }
  0x82   :  { %vm90_vm0 = vcmp.eq.s32.totalorder %v48_v33, %v673_v35  ;;  %vm88_vm3 = vcmp.eq.s32.totalorder %v42_v34, %v673_v35 }
  0x85   :  { %v51_v36 = vpop.permute.xlu1 %50  ;;  %v45_v37 = vpop.permute.xlu0 %44 }
  0x86   :  { %vm91_vm1 = vcmp.eq.s32.totalorder %v51_v36, %v673_v35  ;;  %vm89_vm2 = vcmp.eq.s32.totalorder %v45_v37, %v673_v35 }
  0x87   :  { %vm425_vm4 = vmpackc.low %vm91_vm1, %vm90_vm0 }
  0x88   :  { %vm423_vm5 = vmpackc.low %vm89_vm2, %vm88_vm3 }
  0x89   :  { %482 = vmatprep.mubr.msk.bf16.mxu0 %vm423_vm5, %v561_v38  ;;  %v57_v39 = vpop.permute.xlu1 %56  ;;  %v54_v40 = vpop.permute.xlu0 %53 }
  0x8a   :  { %vm93_vm6 = vcmp.eq.s32.totalorder %v57_v39, %v673_v35  ;;  %483 = vmatmul.mubr.msk.bf16.vlgmr.msra.gmra.mrb[0].mxu0 %vm425_vm4, %v561_v38  ;;  %vm92_vm7 = vcmp.eq.s32.totalorder %v54_v40, %v673_v35 }
  0x8b   :  { %vm427_vm8 = vmpackc.low %vm93_vm6, %vm92_vm7 }
  0x8c   :  { %486 = vmatprep.mubr.msk.bf16.mxu0 %vm427_vm8, %v561_v38  ;;  %vm562_vm8 = vmmov 0  }
  0x8d   :  { %v63_v41 = vpop.permute.xlu1 %62  ;;  %v60_v42 = vpop.permute.xlu0 %59  ;;  %514 = vmatprep.mubr.msk.bf16.mxu1 %vm562_vm8, %v560_v31 }
  0x8e   :  { %vm95_vm9 = vcmp.eq.s32.totalorder %v63_v41, %v673_v35  ;;  %vm94_vm10 = vcmp.eq.s32.totalorder %v60_v42, %v673_v35 }
  0x8f   :  { %vm429_vm11 = vmpackc.low %vm95_vm9, %vm94_vm10 }
  0x91   :  { %v69_v43 = vpop.permute.xlu1 %68  ;;  %v66_v44 = vpop.permute.xlu0 %65 }
  0x92   :  { %vm97_vm12 = vcmp.eq.s32.totalorder %v69_v43, %v673_v35  ;;  %487 = vmatmul.mubr.msk.bf16.gmra.mrb[4].mxu0 %vm429_vm11, %v561_v38  ;;  %vm96_vm13 = vcmp.eq.s32.totalorder %v66_v44, %v673_v35 }
  0x93   :  { %vm431_vm14 = vmpackc.low %vm97_vm12, %vm96_vm13 }
  0x94   :  { %490 = vmatprep.mubr.msk.bf16.mxu0 %vm431_vm14, %v561_v38 }
  0x95   :  { %v75_v45 = vpop.permute.xlu1 %74  ;;  %v72_v46 = vpop.permute.xlu0 %71 }
  0x96   :  { %vm99_vm15 = vcmp.eq.s32.totalorder %v75_v45, %v673_v35  ;;  %vm98_vm0 = vcmp.eq.s32.totalorder %v72_v46, %v673_v35 }
  0x97   :  { %vm433_vm1 = vmpackc.low %vm99_vm15, %vm98_vm0 }
  0x99   :  { %v81_v47 = vpop.permute.xlu1 %80  ;;  %v78_v48 = vpop.permute.xlu0 %77 }
  0x9a   :  { %vm101_vm2 = vcmp.eq.s32.totalorder %v81_v47, %v673_v35  ;;  %491 = vmatmul.mubr.msk.bf16.gmra.mrb[8].mxu0 %vm433_vm1, %v561_v38  ;;  %vm100_vm3 = vcmp.eq.s32.totalorder %v78_v48, %v673_v35 }
  0x9b   :  { %vm435_vm4 = vmpackc.low %vm101_vm2, %vm100_vm3 }
  0x9c   :  { %494 = vmatprep.mubr.msk.bf16.mxu0 %vm435_vm4, %v561_v38 }
  0x9d   :  { %v87_v49 = vpop.permute.xlu1 %86  ;;  %v84_v50 = vpop.permute.xlu0 %83 }
  0x9e   :  { %vm103_vm5 = vcmp.eq.s32.totalorder %v87_v49, %v673_v35  ;;  %vm102_vm6 = vcmp.eq.s32.totalorder %v84_v50, %v673_v35 }
  0x9f   :  { %vm437_vm7 = vmpackc.low %vm103_vm5, %vm102_vm6 }
  0xa1   :  { %v313_v1 = vpop.permute.xlu1 %312  ;;  %v309_v3 = vpop.permute.xlu0 %308 }
  0xa2   :  { %495 = vmatmul.mubr.msk.bf16.gmra.mrb[12].mxu0 %vm437_vm7, %v561_v38  ;;  %vm314_vm9 = vcmp.lt.s32.totalorder %v673_v35, %v313_v1  ;;  %vm310_vm10 = vcmp.ge.s32.totalorder %v673_v35, %v309_v3 }
  0xa3   :  { %vm315_vm11 = vmand %vm310_vm10, %vm314_vm9 }
  0xa4   :  { %v439_v12 = vsel %vm315_vm11, 1.0, %v560_v31 }
  0xa5   :  { %v325_v13 = vpop.permute.xlu0 %324 }
  0xa6   :  { %v327_v15 = vmul.f32 %v439_v12, %v325_v13 }
  0xa8   :  { %v328_v16 = vpack.c.bf16 %v327_v15, %v327_v15 }
 0x15d   :  { %v484_v51 = vpop.f32.mrb[0].mxu0 }
 0x15e   :  { %v242_v52 = vpop.f32.mrb[1].mxu0 }
 0x15f   :  { %v485_v53 = vpop.f32.mrb[2].mxu0 }
 0x160   :  { %v330_v54 = vpack.c.bf16 %v485_v53, %v484_v51  ;;  %v245_v55 = vpop.f32.mrb[3].mxu0 }
 0x161   :  { %v329_v56 = vpack.c.bf16 %v245_v55, %v242_v52 }
 0x163   :  { %499 = vmatpush3.bf16.msra.mxu1 %v329_v56 }
 0x164   :  { %500 = vmatprep.subr.bf16.mxu1 %v560_v31 }
 0x165   :  { %v488_v57 = vpop.f32.mrb[4].mxu0 }
 0x166   :  { %v258_v58 = vpop.f32.mrb[5].mxu0 }
 0x167   :  { %v489_v59 = vpop.f32.mrb[6].mxu0  ;;  %501 = vmatpush3.bf16.msra.mxu1 %v330_v54 }
 0x168   :  { %v332_v60 = vpack.c.bf16 %v489_v59, %v488_v57  ;;  %v261_v61 = vpop.f32.mrb[7].mxu0  ;;  %502 = vmatprep.subr.bf16.mxu1 %v560_v31 }
 0x169   :  { %v331_v62 = vpack.c.bf16 %v261_v61, %v258_v58 }
 0x16b   :  { %503 = vmatpush3.bf16.msra.mxu1 %v331_v62 }
 0x16c   :  { %504 = vmatprep.subr.bf16.mxu1 %v560_v31 }
 0x16d   :  { %v492_v63 = vpop.f32.mrb[8].mxu0 }
 0x16e   :  { %v274_v0 = vpop.f32.mrb[9].mxu0 }
 0x16f   :  { %v493_v2 = vpop.f32.mrb[10].mxu0  ;;  %505 = vmatpush3.bf16.msra.mxu1 %v332_v60 }
 0x170   :  { %v334_v4 = vpack.c.bf16 %v493_v2, %v492_v63  ;;  %v277_v5 = vpop.f32.mrb[11].mxu0  ;;  %506 = vmatprep.subr.bf16.mxu1 %v560_v31 }
 0x171   :  { %v333_v6 = vpack.c.bf16 %v277_v5, %v274_v0 }
 0x173   :  { %507 = vmatpush3.bf16.msra.mxu1 %v333_v6 }
 0x174   :  { %508 = vmatprep.subr.bf16.mxu1 %v560_v31 }
 0x175   :  { %v496_v7 = vpop.f32.mrb[12].mxu0 }
 0x176   :  { %v290_v8 = vpop.f32.mrb[13].mxu0 }
 0x177   :  { %v497_v9 = vpop.f32.mrb[14].mxu0  ;;  %509 = vmatpush3.bf16.msra.mxu1 %v334_v4 }
 0x178   :  { %v336_v10 = vpack.c.bf16 %v497_v9, %v496_v7  ;;  %v293_v11 = vpop.f32.mrb[15].mxu0  ;;  %510 = vmatprep.subr.bf16.mxu1 %v560_v31 }
 0x179   :  { %v335_v14 = vpack.c.bf16 %v293_v11, %v290_v8 }
 0x17b   :  { %511 = vmatpush3.bf16.msra.mxu1 %v335_v14 }
 0x17c   :  { %512 = vmatprep.subr.bf16.mxu1 %v560_v31 }
 0x17f   :  { %513 = vmatpush3.bf16.msra.mxu1 %v336_v10 }
 0x182   :  { %515 = vmatmul.mubr.bf16.vlgmr.msra.gmra.mrb[0].mxu1 %v328_v16 }
 0x255   :  { %v378_v18 = vpop.f32.mrb[0].mxu1 }
 0x256   :  { %v379_v19 = vadd.f32 %v440_v17, %v378_v18  ;;  %v516_v20 = vpop.f32.mrb[1].mxu1 }
 0x257   :  { %v381_v21 = vpop.f32.mrb[2].mxu1 }
 0x258   :  { %384 = vst [vmem:[#allocation2] sm:$0xff] %v379_v19  ;;  %v517_v22 = vpop.f32.mrb[3].mxu1 }
 0x259   :  { %546 = shalt.err (!%p543_p4)
}
 0x25a   :  { %s547_s4 = scalar_lea.hbm %s722_s5, 128 }
 0x25b   :  { %p548_p5 = scmp.ne.s32.totalorder %s722_s5, %s547_s4  ;;  %p551_p6 = scmp.lt.u32.totalorder %s547_s4, %s722_s5 }
 0x25d   :  { %p553_p7 = pnand %p551_p6, %p548_p5 }
 0x25f   :  { %556 = shalt.err (!%p553_p7)
}
 0x260   :  { %394 = dma.vmem_to_hbm [thread:$0]  %s392_s19, 128, %s722_s5, [#allocation3]  }
 0x261   :  { %557 = dma.done.wait [#allocation3], 128  }
 0x262   :  { %558 = vsyncadd [#allocation3], 4294967168 }
 0x263   :  { %398 = vsyncpa [#allocation3], 1 }

</bundles_post_ra>
